<compile_context>
chip_gen: v7x
topology: tpu7x:2x2x1
jax: 0.10.0
libtpu: 0.0.40
codegen_flags: <defaults>
</compile_context>

<pallas_src>
import jax
import jax.numpy as jnp
from jax.experimental import pallas as pl
from jax.experimental.pallas import tpu as pltpu


def _round_up(x, m):
    return ((x + m - 1) // m) * m


def _tpu_vmem_capacity():
    """Physical VMEM bytes of the attached TPU (fallback: 64 MiB = v7x size)."""
    try:
        info = pltpu.get_tpu_info()
        cap = int(getattr(info, "vmem_capacity_bytes", 0))
        if cap > 0:
            return cap
    except Exception:
        pass
    return 64 * 1024 * 1024


def _pick_tm(batch):
    """Batch tile: (8,)-aligned, minimal padding, >=2 tiles when cheap."""
    if batch <= 128:
        tm = _round_up(batch, 8)
    else:
        cands = (128, 256, 512)
        # Minimize padded batch; break ties toward the larger tile.
        tm = min(cands, key=lambda c: (_round_up(batch, c), -c))
    b_p = _round_up(batch, tm)
    # Give the "parallel" batch axis >= 2 tiles (v7x dual TensorCore) when the
    # halved tile stays a multiple of 8 and padding does not grow.
    if b_p // tm < 2 and tm >= 16 and tm % 16 == 0:
        tm //= 2
        b_p = _round_up(batch, tm)
    return tm, b_p


def _pick_tn(p_p, tn_budget):
    """Largest multiple-of-256 divisor of p_p that fits the VMEM budget."""
    if p_p <= tn_budget or p_p <= 256:
        return p_p
    divisors = [c for c in range(256, p_p, 256) if p_p % c == 0]
    if not divisors:
        return p_p
    fitting = [c for c in divisors if c <= tn_budget]
    return max(fitting) if fitting else min(divisors)


def _pad2(x, rows, cols):
    r, c = x.shape
    if (r, c) == (rows, cols):
        return x  # already aligned: no wrapper-side HBM copy
    return jnp.pad(x, ((0, rows - r), (0, cols - c)))


def _embedding_projection_kernel(emb_ref, w1_ref, b1_ref, w2_ref, b2_ref,
                                 out_ref, hid_ref):
    """out[i, j] = silu(emb[i] @ W1 + b1) @ W2[:, j] + b2[j]."""
    j = pl.program_id(1)

    # Hidden activation for this batch tile: computed once at the first column
    # tile (j is the sequential innermost axis), stored in W2's dtype, reused
    # for all remaining column tiles.
    @pl.when(j == 0)
    def _():
        x = jnp.dot(emb_ref[...], w1_ref[...],
                    preferred_element_type=jnp.float32)
        x = x + b1_ref[...].astype(jnp.float32)
        hid_ref[...] = (x * jax.nn.sigmoid(x)).astype(hid_ref.dtype)  # SiLU

    y = jnp.dot(hid_ref[...], w2_ref[...], preferred_element_type=jnp.float32)
    y = y + b2_ref[...].astype(jnp.float32)
    out_ref[...] = y.astype(out_ref.dtype)


def embedding_projection(emb, w1, b1, w2, b2, max_tn=None):
    """Fused Linear -> SiLU -> Linear.

    emb: [B, emb_dim]; w1: [emb_dim, proj_dim]; b1: [proj_dim];
    w2: [proj_dim, proj_dim]; b2: [proj_dim]  ->  [B, proj_dim]
    `max_tn` is a test hook that caps the W2 column tile.
    """
    batch, emb_dim = emb.shape
    proj_dim = w1.shape[1]
    out_dtype = emb.dtype

    # ---- TPU-friendly padded shapes. ----
    e_p = _round_up(emb_dim, 128)
    # proj_dim padded to a multiple of 256 (>128) so column tiles fill the
    # 256-wide MXU output dim on v6e/v7x.
    p_p = 128 if proj_dim <= 128 else _round_up(proj_dim, 256)
    tm, b_p = _pick_tm(batch)

    # ---- Generation-aware VMEM plan. ----
    vmem_cap = _tpu_vmem_capacity()
    budget = int(vmem_cap * 0.85)

    a_bytes = jnp.dtype(emb.dtype).itemsize
    w1_bytes = jnp.dtype(w1.dtype).itemsize
    w2_bytes = jnp.dtype(w2.dtype).itemsize
    o_bytes = jnp.dtype(out_dtype).itemsize

    # Budget conservatively for double-buffered W1/b1 so the fallback path
    # (default buffering) is also guaranteed to fit.
    resident = 2 * (e_p * p_p + p_p) * w1_bytes             # W1, b1
    hid_bytes = tm * p_p * w2_bytes                         # hidden scratch
    emb_tiles = 2 * tm * e_p * a_bytes                      # emb tile (2-buf)
    per_col = 2 * (p_p * w2_bytes + w2_bytes + tm * o_bytes)  # W2/b2/out (2-buf)
    tn_budget = max((budget - resident - hid_bytes - emb_tiles) // per_col, 256)
    if max_tn is not None:
        tn_budget = min(tn_budget, max_tn)
    tn = _pick_tn(p_p, tn_budget)

    need = resident + hid_bytes + emb_tiles + per_col * tn
    # Headroom below physical capacity, but never clamp below what we need.
    vmem_limit = max(min(budget, max(int(need * 1.15), 8 * 1024 * 1024)), need)

    # ---- Pad operands (no-op when already aligned / pre-padded). ----
    emb_p = _pad2(emb, b_p, e_p)
    w1_p = _pad2(w1, e_p, p_p)
    b1_p = _pad2(b1.reshape(1, -1), 1, p_p)
    w2_p = _pad2(w2, p_p, p_p)
    b2_p = _pad2(b2.reshape(1, -1), 1, p_p)

    n_batch_tiles = b_p // tm
    w2_reads = 1 if tn == p_p else n_batch_tiles  # resident vs re-streamed
    cost = pl.CostEstimate(
        flops=2 * b_p * e_p * p_p + 2 * b_p * p_p * p_p,
        transcendentals=b_p * p_p,
        bytes_accessed=(b_p * e_p * a_bytes + e_p * p_p * w1_bytes
                        + p_p * w1_bytes + w2_reads * p_p * p_p * w2_bytes
                        + p_p * w2_bytes + b_p * p_p * o_bytes),
    )

    def _build(single_buffer_weights):
        if single_buffer_weights:
            # W1/b1 are fetched exactly once (constant index_map): single
            # buffer saves a full extra copy of W1 in VMEM.
            w1_spec = pl.BlockSpec((e_p, p_p), lambda i, j: (0, 0),
                                   pipeline_mode=pl.Buffered(1))
            b1_spec = pl.BlockSpec((1, p_p), lambda i, j: (0, 0),
                                   pipeline_mode=pl.Buffered(1))
        else:
            w1_spec = pl.BlockSpec((e_p, p_p), lambda i, j: (0, 0))
            b1_spec = pl.BlockSpec((1, p_p), lambda i, j: (0, 0))
        return pl.pallas_call(
            _embedding_projection_kernel,
            out_shape=jax.ShapeDtypeStruct((b_p, p_p), out_dtype),
            grid=(b_p // tm, p_p // tn),
            in_specs=[
                pl.BlockSpec((tm, e_p), lambda i, j: (i, 0)),   # emb batch tile
                w1_spec,                                        # W1 (resident)
                b1_spec,                                        # b1 (resident)
                pl.BlockSpec((p_p, tn), lambda i, j: (0, j)),   # W2 column tile
                pl.BlockSpec((1, tn), lambda i, j: (0, j)),     # b2 column tile
            ],
            out_specs=pl.BlockSpec((tm, tn), lambda i, j: (i, j)),
            scratch_shapes=[pltpu.VMEM((tm, p_p), w2.dtype)],
            compiler_params=pltpu.CompilerParams(
                dimension_semantics=("parallel", "arbitrary"),
                vmem_limit_bytes=int(vmem_limit),
            ),
            cost_estimate=cost,
        )

    try:
        out_p = jax.block_until_ready(
            _build(True)(emb_p, w1_p, b1_p, w2_p, b2_p))
    except Exception:
        # pipeline_mode / Buffered(1) unsupported by this JAX build: fall back
        # to default (double-buffered) weight staging.
        out_p = _build(False)(emb_p, w1_p, b1_p, w2_p, b2_p)

    return out_p[:batch, :proj_dim]


def init_params(key, emb_dim, proj_dim, dtype=jnp.float32):
    """Mirror torch.nn.Linear default init (uniform(+-1/sqrt(fan_in)))."""
    k1, k2, k3, k4 = jax.random.split(key, 4)
    bound1 = 1.0 / (emb_dim ** 0.5)
    bound2 = 1.0 / (proj_dim ** 0.5)
    w1 = jax.random.uniform(k1, (emb_dim, proj_dim), dtype, -bound1, bound1)
    b1 = jax.random.uniform(k2, (proj_dim,), dtype, -bound1, bound1)
    w2 = jax.random.uniform(k3, (proj_dim, proj_dim), dtype, -bound2, bound2)
    b2 = jax.random.uniform(k4, (proj_dim,), dtype, -bound2, bound2)
    return w1, b1, w2, b2


def reference(emb, w1, b1, w2, b2):
    x = emb @ w1 + b1
    x = x * jax.nn.sigmoid(x)
    return x @ w2 + b2


if __name__ == "__main__":
    key = jax.random.PRNGKey(0)
    k_e1, k_p1, k_e2, k_p2, k_e3, k_p3 = jax.random.split(key, 6)

    # --- Docstring case: emb_dim=16, proj_dim=64, batch=4. ---
    batch, emb_dim, proj_dim = 4, 16, 64
    emb = jax.random.normal(k_e1, (batch, emb_dim), jnp.float32)
    w1, b1, w2, b2 = init_params(k_p1, emb_dim, proj_dim)
    out = jax.block_until_ready(embedding_projection(emb, w1, b1, w2, b2))
    ref = reference(emb, w1, b1, w2, b2)
    assert out.shape == (batch, proj_dim), out.shape
    assert jnp.allclose(out, ref, atol=1e-5, rtol=1e-5), \
        float(jnp.max(jnp.abs(out - ref)))

    # --- Unaligned small case: exercises padding + multi-tile batch grid. ---
    batch2, emb_dim2, proj_dim2 = 48, 24, 200
    emb2 = jax.random.normal(k_e2, (batch2, emb_dim2), jnp.float32)
    w1b, b1b, w2b, b2b = init_params(k_p2, emb_dim2, proj_dim2)
    out2 = jax.block_until_ready(
        embedding_projection(emb2, w1b, b1b, w2b, b2b))
    ref2 = reference(emb2, w1b, b1b, w2b, b2b)
    assert out2.shape == (batch2, proj_dim2), out2.shape
    assert jnp.allclose(out2, ref2, atol=1e-4, rtol=1e-4), \
        float(jnp.max(jnp.abs(out2 - ref2)))

    # --- Forced W2 column tiling: exercises hidden-activation reuse across j. ---
    batch3, emb_dim3, proj_dim3 = 16, 32, 512
    emb3 = jax.random.normal(k_e3, (batch3, emb_dim3), jnp.float32)
    w1c, b1c, w2c, b2c = init_params(k_p3, emb_dim3, proj_dim3)
    out3 = jax.block_until_ready(
        embedding_projection(emb3, w1c, b1c, w2c, b2c, max_tn=256))
    ref3 = reference(emb3, w1c, b1c, w2c, b2c)
    assert out3.shape == (batch3, proj_dim3), out3.shape
    assert jnp.allclose(out3, ref3, atol=1e-4, rtol=1e-4), \
        float(jnp.max(jnp.abs(out3 - ref3)))

    print("KERNEL_OK")
</pallas_src>

<mosaic_0001>
module attributes {stable_mosaic.version = 11 : i64} {
  func.func @_embedding_projection_kernel(%arg0: i32, %arg1: i32, %arg2: memref<8x128xf32, #tpu.memory_space<vmem>>, %arg3: memref<128x128xf32, #tpu.memory_space<vmem>>, %arg4: memref<1x128xf32, #tpu.memory_space<vmem>>, %arg5: memref<128x128xf32, #tpu.memory_space<vmem>>, %arg6: memref<1x128xf32, #tpu.memory_space<vmem>>, %arg7: memref<8x128xf32, #tpu.memory_space<vmem>>, %arg8: memref<8x128xf32, #tpu.memory_space<vmem>>) attributes {dimension_semantics = [#tpu.dimension_semantics<parallel>, #tpu.dimension_semantics<arbitrary>], iteration_bounds = array<i64: 1, 1>, scalar_prefetch = 0 : i64, scratch_operands = 1 : i64, tpu.core_type = #tpu.core_type<tc>, window_params = [{transform_indices = @transform_0, window_bounds = array<i64: 8, 128>}, {pipeline_mode = #tpu.pipeline_mode<synchronous>, transform_indices = @transform_1, window_bounds = array<i64: 128, 128>}, {pipeline_mode = #tpu.pipeline_mode<synchronous>, transform_indices = @transform_2, window_bounds = array<i64: 1, 128>}, {transform_indices = @transform_3, window_bounds = array<i64: 128, 128>}, {transform_indices = @transform_4, window_bounds = array<i64: 1, 128>}, {transform_indices = @transform_5, window_bounds = array<i64: 8, 128>}]} {
    %c0_i32 = arith.constant 0 : i32
    %0 = arith.cmpi eq, %arg1, %c0_i32 : i32
    %1 = arith.extui %0 : i1 to i32
    %c0_i32_0 = arith.constant 0 : i32
    %2 = arith.cmpi ne, %1, %c0_i32_0 : i32
    scf.if %2 {
      %c0_8 = arith.constant 0 : index
      %c0_9 = arith.constant 0 : index
      %10 = vector.load %arg2[%c0_8, %c0_9] : memref<8x128xf32, #tpu.memory_space<vmem>>, vector<8x128xf32>
      %c0_10 = arith.constant 0 : index
      %c0_11 = arith.constant 0 : index
      %11 = vector.load %arg3[%c0_10, %c0_11] : memref<128x128xf32, #tpu.memory_space<vmem>>, vector<128x128xf32>
      %cst_12 = arith.constant dense<0.000000e+00> : vector<8x128xf32>
      %12 = tpu.matmul %10, %11, %cst_12 {dimension_numbers = #tpu.dot_dimension_numbers<[1], [0], [0], [1], [0, 0, 1, 1], [], []>} : vector<8x128xf32>, vector<128x128xf32>, vector<8x128xf32> -> vector<8x128xf32>
      %c0_13 = arith.constant 0 : index
      %c0_14 = arith.constant 0 : index
      %13 = vector.load %arg4[%c0_13, %c0_14] : memref<1x128xf32, #tpu.memory_space<vmem>>, vector<1x128xf32>
      %14 = vector.broadcast %13 : vector<1x128xf32> to vector<8x128xf32>
      %15 = arith.addf %12, %14 : vector<8x128xf32>
      %16 = arith.negf %15 : vector<8x128xf32>
      %17 = math.exp %16 : vector<8x128xf32>
      %cst_15 = arith.constant 1.000000e+00 : f32
      %18 = vector.broadcast %cst_15 : f32 to vector<8x128xf32>
      %19 = arith.addf %18, %17 : vector<8x128xf32>
      %20 = arith.divf %18, %19 : vector<8x128xf32>
      %21 = arith.mulf %15, %20 : vector<8x128xf32>
      %c0_16 = arith.constant 0 : index
      %c0_17 = arith.constant 0 : index
      %22 = vector.load %arg8[%c0_16, %c0_17] : memref<8x128xf32, #tpu.memory_space<vmem>>, vector<8x128xf32>
      tpu.vector_store %arg8[%c0_16, %c0_17], %21 {strides = array<i32>} : memref<8x128xf32, #tpu.memory_space<vmem>>, vector<8x128xf32>,
    } else {
    }
    %c0 = arith.constant 0 : index
    %c0_1 = arith.constant 0 : index
    %3 = vector.load %arg8[%c0, %c0_1] : memref<8x128xf32, #tpu.memory_space<vmem>>, vector<8x128xf32>
    %c0_2 = arith.constant 0 : index
    %c0_3 = arith.constant 0 : index
    %4 = vector.load %arg5[%c0_2, %c0_3] : memref<128x128xf32, #tpu.memory_space<vmem>>, vector<128x128xf32>
    %cst = arith.constant dense<0.000000e+00> : vector<8x128xf32>
    %5 = tpu.matmul %3, %4, %cst {dimension_numbers = #tpu.dot_dimension_numbers<[1], [0], [0], [1], [0, 0, 1, 1], [], []>} : vector<8x128xf32>, vector<128x128xf32>, vector<8x128xf32> -> vector<8x128xf32>
    %c0_4 = arith.constant 0 : index
    %c0_5 = arith.constant 0 : index
    %6 = vector.load %arg6[%c0_4, %c0_5] : memref<1x128xf32, #tpu.memory_space<vmem>>, vector<1x128xf32>
    %7 = vector.broadcast %6 : vector<1x128xf32> to vector<8x128xf32>
    %8 = arith.addf %5, %7 : vector<8x128xf32>
    %c0_6 = arith.constant 0 : index
    %c0_7 = arith.constant 0 : index
    %9 = vector.load %arg7[%c0_6, %c0_7] : memref<8x128xf32, #tpu.memory_space<vmem>>, vector<8x128xf32>
    tpu.vector_store %arg7[%c0_6, %c0_7], %8 {strides = array<i32>} : memref<8x128xf32, #tpu.memory_space<vmem>>, vector<8x128xf32>,
    return
  }
  func.func @transform_0(%arg0: i32, %arg1: i32) -> (i32, i32) {
    %c0_i32 = arith.constant 0 : i32
    %c0_i32_0 = arith.constant 0 : i32
    return %arg0, %c0_i32 : i32, i32
  }
  func.func @transform_1(%arg0: i32, %arg1: i32) -> (i32, i32) {
    %c0_i32 = arith.constant 0 : i32
    %c0_i32_0 = arith.constant 0 : i32
    %c0_i32_1 = arith.constant 0 : i32
    return %c0_i32, %c0_i32_0 : i32, i32
  }
  func.func @transform_2(%arg0: i32, %arg1: i32) -> (i32, i32) {
    %c0_i32 = arith.constant 0 : i32
    %c0_i32_0 = arith.constant 0 : i32
    %c0_i32_1 = arith.constant 0 : i32
    return %c0_i32, %c0_i32_0 : i32, i32
  }
  func.func @transform_3(%arg0: i32, %arg1: i32) -> (i32, i32) {
    %c0_i32 = arith.constant 0 : i32
    %c0_i32_0 = arith.constant 0 : i32
    return %c0_i32, %arg1 : i32, i32
  }
  func.func @transform_4(%arg0: i32, %arg1: i32) -> (i32, i32) {
    %c0_i32 = arith.constant 0 : i32
    %c0_i32_0 = arith.constant 0 : i32
    return %c0_i32, %arg1 : i32, i32
  }
  func.func @transform_5(%arg0: i32, %arg1: i32) -> (i32, i32) {
    %c0_i32 = arith.constant 0 : i32
    return %arg0, %arg1 : i32, i32
  }
}

module attributes {stable_mosaic.version = 11 : i64} {
  func.func @_embedding_projection_kernel(%arg0: i32, %arg1: i32, %arg2: memref<8x128xf32, #tpu.memory_space<vmem>>, %arg3: memref<128x128xf32, #tpu.memory_space<vmem>>, %arg4: memref<1x128xf32, #tpu.memory_space<vmem>>, %arg5: memref<128x128xf32, #tpu.memory_space<vmem>>, %arg6: memref<1x128xf32, #tpu.memory_space<vmem>>, %arg7: memref<8x128xf32, #tpu.memory_space<vmem>>, %arg8: memref<8x128xf32, #tpu.memory_space<vmem>>) attributes {dimension_semantics = [#tpu.dimension_semantics<parallel>, #tpu.dimension_semantics<arbitrary>], iteration_bounds = array<i64: 1, 1>, scalar_prefetch = 0 : i64, scratch_operands = 1 : i64, tpu.core_type = #tpu.core_type<tc>, window_params = [{transform_indices = @transform_0, window_bounds = array<i64: 8, 128>}, {pipeline_mode = #tpu.pipeline_mode<synchronous>, transform_indices = @transform_1, window_bounds = array<i64: 128, 128>}, {pipeline_mode = #tpu.pipeline_mode<synchronous>, transform_indices = @transform_2, window_bounds = array<i64: 1, 128>}, {transform_indices = @transform_3, window_bounds = array<i64: 128, 128>}, {transform_indices = @transform_4, window_bounds = array<i64: 1, 128>}, {transform_indices = @transform_5, window_bounds = array<i64: 8, 128>}]} {
    %c0_i32 = arith.constant 0 : i32
    %0 = arith.cmpi eq, %arg1, %c0_i32 : i32
    %1 = arith.extui %0 : i1 to i32
    %c0_i32_0 = arith.constant 0 : i32
    %2 = arith.cmpi ne, %1, %c0_i32_0 : i32
    scf.if %2 {
      %c0_8 = arith.constant 0 : index
      %c0_9 = arith.constant 0 : index
      %10 = vector.load %arg2[%c0_8, %c0_9] : memref<8x128xf32, #tpu.memory_space<vmem>>, vector<8x128xf32>
      %c0_10 = arith.constant 0 : index
      %c0_11 = arith.constant 0 : index
      %11 = vector.load %arg3[%c0_10, %c0_11] : memref<128x128xf32, #tpu.memory_space<vmem>>, vector<128x128xf32>
      %cst_12 = arith.constant dense<0.000000e+00> : vector<8x128xf32>
      %12 = tpu.matmul %10, %11, %cst_12 {dimension_numbers = #tpu.dot_dimension_numbers<[1], [0], [0], [1], [0, 0, 1, 1], [], []>} : vector<8x128xf32>, vector<128x128xf32>, vector<8x128xf32> -> vector<8x128xf32>
      %c0_13 = arith.constant 0 : index
      %c0_14 = arith.constant 0 : index
      %13 = vector.load %arg4[%c0_13, %c0_14] : memref<1x128xf32, #tpu.memory_space<vmem>>, vector<1x128xf32>
      %14 = vector.broadcast %13 : vector<1x128xf32> to vector<8x128xf32>
      %15 = arith.addf %12, %14 : vector<8x128xf32>
      %16 = arith.negf %15 : vector<8x128xf32>
      %17 = math.exp %16 : vector<8x128xf32>
      %cst_15 = arith.constant 1.000000e+00 : f32
      %18 = vector.broadcast %cst_15 : f32 to vector<8x128xf32>
      %19 = arith.addf %18, %17 : vector<8x128xf32>
      %20 = arith.divf %18, %19 : vector<8x128xf32>
      %21 = arith.mulf %15, %20 : vector<8x128xf32>
      %c0_16 = arith.constant 0 : index
      %c0_17 = arith.constant 0 : index
      %22 = vector.load %arg8[%c0_16, %c0_17] : memref<8x128xf32, #tpu.memory_space<vmem>>, vector<8x128xf32>
      tpu.vector_store %arg8[%c0_16, %c0_17], %21 {strides = array<i32>} : memref<8x128xf32, #tpu.memory_space<vmem>>, vector<8x128xf32>,
    } else {
    }
    %c0 = arith.constant 0 : index
    %c0_1 = arith.constant 0 : index
    %3 = vector.load %arg8[%c0, %c0_1] : memref<8x128xf32, #tpu.memory_space<vmem>>, vector<8x128xf32>
    %c0_2 = arith.constant 0 : index
    %c0_3 = arith.constant 0 : index
    %4 = vector.load %arg5[%c0_2, %c0_3] : memref<128x128xf32, #tpu.memory_space<vmem>>, vector<128x128xf32>
    %cst = arith.constant dense<0.000000e+00> : vector<8x128xf32>
    %5 = tpu.matmul %3, %4, %cst {dimension_numbers = #tpu.dot_dimension_numbers<[1], [0], [0], [1], [0, 0, 1, 1], [], []>} : vector<8x128xf32>, vector<128x128xf32>, vector<8x128xf32> -> vector<8x128xf32>
    %c0_4 = arith.constant 0 : index
    %c0_5 = arith.constant 0 : index
    %6 = vector.load %arg6[%c0_4, %c0_5] : memref<1x128xf32, #tpu.memory_space<vmem>>, vector<1x128xf32>
    %7 = vector.broadcast %6 : vector<1x128xf32> to vector<8x128xf32>
    %8 = arith.addf %5, %7 : vector<8x128xf32>
    %c0_6 = arith.constant 0 : index
    %c0_7 = arith.constant 0 : index
    %9 = vector.load %arg7[%c0_6, %c0_7] : memref<8x128xf32, #tpu.memory_space<vmem>>, vector<8x128xf32>
    tpu.vector_store %arg7[%c0_6, %c0_7], %8 {strides = array<i32>} : memref<8x128xf32, #tpu.memory_space<vmem>>, vector<8x128xf32>,
    return
  }
  func.func @transform_0(%arg0: i32, %arg1: i32) -> (i32, i32) {
    %c0_i32 = arith.constant 0 : i32
    %c0_i32_0 = arith.constant 0 : i32
    return %arg0, %c0_i32 : i32, i32
  }
  func.func @transform_1(%arg0: i32, %arg1: i32) -> (i32, i32) {
    %c0_i32 = arith.constant 0 : i32
    %c0_i32_0 = arith.constant 0 : i32
    %c0_i32_1 = arith.constant 0 : i32
    return %c0_i32, %c0_i32_0 : i32, i32
  }
  func.func @transform_2(%arg0: i32, %arg1: i32) -> (i32, i32) {
    %c0_i32 = arith.constant 0 : i32
    %c0_i32_0 = arith.constant 0 : i32
    %c0_i32_1 = arith.constant 0 : i32
    return %c0_i32, %c0_i32_0 : i32, i32
  }
  func.func @transform_3(%arg0: i32, %arg1: i32) -> (i32, i32) {
    %c0_i32 = arith.constant 0 : i32
    %c0_i32_0 = arith.constant 0 : i32
    return %c0_i32, %arg1 : i32, i32
  }
  func.func @transform_4(%arg0: i32, %arg1: i32) -> (i32, i32) {
    %c0_i32 = arith.constant 0 : i32
    %c0_i32_0 = arith.constant 0 : i32
    return %c0_i32, %arg1 : i32, i32
  }
  func.func @transform_5(%arg0: i32, %arg1: i32) -> (i32, i32) {
    %c0_i32 = arith.constant 0 : i32
    return %arg0, %arg1 : i32, i32
  }
}

</mosaic_0001>

<bundles_post_ra>
// kernel: tpu_custom_call.1
= control target key start
LH: loop header
LB: loop body
LE: loop exit
PB: predicated region body
PF: predicated region fallthrough
CT: control target
= control target key end

     0   :  { %10 = vsyncpa [#allocation4], 0  ;;  %s654_s0 = inlined_call_operand.hbm [shape: f32[8,128], index: 0, kind: input, shape index: {}]   ;;  %s655_s1 = inlined_call_operand.hbm [shape: f32[128,128], index: 1, kind: input, shape index: {}]   ;;  %s656_s2 = inlined_call_operand.vmem [shape: f32[1,128], index: 2, kind: input, shape index: {}]   ;;  %s657_s3 = inlined_call_operand.hbm [shape: f32[128,128], index: 3, kind: input, shape index: {}]   ;;  %s658_s4 = inlined_call_operand.vmem [shape: f32[1,128], index: 4, kind: input, shape index: {}]   ;;  %s659_s5 = inlined_call_operand.hbm [shape: f32[8,128], index: 5, kind: output, shape index: {}]  }
   0x1   :  { %11 = vsyncpa [#allocation7], 0 }
   0x2   :  { %12 = vsyncpa [#allocation5], 0  ;;  %s539_s18 = smov [#allocation6]   ;;  %s445_s22 = scalar_lea.hbm %s655_s1, 2048 }
   0x3   :  { %s28_s19 = sshll.u32 %s539_s18, 4  ;;  %p446_p0 = scmp.ne.s32.totalorder %s655_s1, %s445_s22  ;;  %s29_s19 = int_to_ptr.vmem [resolvable:$true] %s28_s19 }
   0x4   :  { %p449_p1 = scmp.lt.u32.totalorder %s445_s22, %s655_s1 }
   0x6   :  { %p451_p2 = pnand %p449_p1, %p446_p0 }
   0x8   :  { %454 = shalt.err (!%p451_p2)
}
   0x9   :  { %s455_s27 = scalar_lea.vmem %s29_s19, 2048  ;;  %p460_p4 = scmp.lt.s32.totalorder %s29_s19, %s29_s19 }
   0xa   :  { %p456_p3 = scmp.ne.s32.totalorder %s29_s19, %s455_s27  ;;  %p461_p5 = scmp.lt.s32.totalorder %s455_s27, %s455_s27 }
   0xc   :  { %p462_p6 = por %p461_p5, %p460_p4 }
   0xe   :  { %p463_p7 = pnand %p462_p6, %p456_p3 }
  0x10   :  { %466 = shalt.err (!%p463_p7)
}
  0x11   :  { %s540_s28 = smov 128   ;;  %s541_s29 = smov 8  }
  0x12   :  { %34 = dma.hbm_to_vmem [thread:$0]  %s655_s1, 2048, %s29_s19, [#allocation7], %s540_s28, %s540_s28, %s541_s29  }
  0x13   :  { %s542_s7 = smov [#allocation3]   ;;  %s543_s9 = smov [#allocation8]  }
  0x14   :  { %s19_s8 = sshll.u32 %s542_s7, 4  ;;  %s42_s10 = sshll.u32 %s543_s9, 4  ;;  %s20_s8 = int_to_ptr.vmem [resolvable:$true] %s19_s8  ;;  %s43_s10 = int_to_ptr.vmem [resolvable:$true] %s42_s10 }
  0x15   :  { %s467_s13 = scalar_lea.hbm %s654_s0, 128 }
  0x16   :  { %p468_p8 = scmp.ne.s32.totalorder %s654_s0, %s467_s13  ;;  %p471_p9 = scmp.lt.u32.totalorder %s467_s13, %s654_s0 }
  0x18   :  { %p473_p10 = pnand %p471_p9, %p468_p8 }
  0x1a   :  { %476 = shalt.err (!%p473_p10)
}
  0x1b   :  { %s477_s1 = scalar_lea.vmem %s20_s8, 128  ;;  %p482_p12 = scmp.lt.s32.totalorder %s20_s8, %s20_s8 }
  0x1c   :  { %p478_p11 = scmp.ne.s32.totalorder %s20_s8, %s477_s1  ;;  %p483_p13 = scmp.lt.s32.totalorder %s477_s1, %s477_s1 }
  0x1e   :  { %p484_p0 = por %p483_p13, %p482_p12 }
  0x20   :  { %p485_p1 = pnand %p484_p0, %p478_p11 }
  0x22   :  { %488 = shalt.err (!%p485_p1)
}
  0x23   :  { %22 = dma.hbm_to_vmem [thread:$0]  %s654_s0, 128, %s20_s8, [#allocation4]  }
  0x24   :  { %s489_s22 = scalar_lea.hbm %s657_s3, 2048 }
  0x25   :  { %p490_p2 = scmp.ne.s32.totalorder %s657_s3, %s489_s22  ;;  %p493_p3 = scmp.lt.u32.totalorder %s489_s22, %s657_s3 }
  0x27   :  { %p495_p4 = pnand %p493_p3, %p490_p2 }
  0x29   :  { %498 = shalt.err (!%p495_p4)
}
  0x2a   :  { %s499_s27 = scalar_lea.vmem %s43_s10, 2048  ;;  %p504_p6 = scmp.lt.s32.totalorder %s43_s10, %s43_s10 }
  0x2b   :  { %p500_p5 = scmp.ne.s32.totalorder %s43_s10, %s499_s27  ;;  %p505_p7 = scmp.lt.s32.totalorder %s499_s27, %s499_s27 }
  0x2d   :  { %p506_p8 = por %p505_p7, %p504_p6 }
  0x2f   :  { %p507_p9 = pnand %p506_p8, %p500_p5 }
  0x31   :  { %510 = shalt.err (!%p507_p9)
}
  0x32   :  { %48 = dma.hbm_to_vmem [thread:$0]  %s657_s3, 2048, %s43_s10, [#allocation7], %s540_s28, %s540_s28, %s541_s29  }
  0x33   :  { %533 = dma.done.wait [#allocation4], 128  }
  0x34   :  { %534 = vsyncadd [#allocation4], 4294967168 }
  0x35   :  { %535 = dma.done.wait [#allocation7], 4096  }
  0x36   :  { %536 = vsyncadd [#allocation7], 4294963200  ;;  %v544_v0 = vmov 0.0|0.0   ;;  %vm545_vm0 = vmmov 0   ;;  %v546_v1 = vmov 0.0   ;;  %v65_v2 = vld [vmem:[#allocation6] sm:$0xff] }
  0x37   :  { %384 = vmatprep.subr.bf16.mxu0 %v544_v0  ;;  %346 = vmatprep.mubr.msk.f32.mxu0 %vm545_vm0, %v546_v1  ;;  %v66_v3 = vld [vmem:[#allocation6 + $0x8] sm:$0xff]  ;;  %v67_v4 = vld [vmem:[#allocation6 + $0x10] sm:$0xff]  ;;  %v68_v6 = vld [vmem:[#allocation6 + $0x18] sm:$0xff]  ;;  %s547_s7 = smov [#allocation9]  }
  0x38   :  { %408 = vmatprep.subr.bf16.mxu1 %v544_v0  ;;  %381 = vmatprep.mubr.msk.f32.mxu1 %vm545_vm0, %v546_v1  ;;  %v385_v5 = vpack.c.bf16 %v66_v3, %v65_v2  ;;  %v388_v7 = vpack.c.bf16 %v68_v6, %v67_v4  ;;  %v69_v8 = vld [vmem:[#allocation6 + $0x20] sm:$0xff]  ;;  %v70_v9 = vld [vmem:[#allocation6 + $0x28] sm:$0xff]  ;;  %v71_v11 = vld [vmem:[#allocation6 + $0x30] sm:$0xff]  ;;  %s267_s8 = sshll.u32 %s547_s7, 4  ;;  %s268_s8 = int_to_ptr.vmem [resolvable:$true] %s267_s8 }
  0x39   :  { %v391_v10 = vpack.c.bf16 %v70_v9, %v69_v8  ;;  %v72_v12 = vld [vmem:[#allocation6 + $0x38] sm:$0xff]  ;;  %v73_v14 = vld [vmem:[#allocation6 + $0x40] sm:$0xff]  ;;  %v74_v15 = vld [vmem:[#allocation6 + $0x48] sm:$0xff]  ;;  %p516_p11 = scmp.lt.s32.totalorder %s268_s8, %s268_s8 }
  0x3a   :  { %386 = vmatpush3.bf16.msra.mxu0 %v385_v5  ;;  %v394_v13 = vpack.c.bf16 %v72_v12, %v71_v11  ;;  %v397_v16 = vpack.c.bf16 %v74_v15, %v73_v14  ;;  %v75_v17 = vld [vmem:[#allocation6 + $0x50] sm:$0xff]  ;;  %v76_v18 = vld [vmem:[#allocation6 + $0x58] sm:$0xff]  ;;  %v77_v20 = vld [vmem:[#allocation6 + $0x60] sm:$0xff] }
  0x3b   :  { %387 = vmatprep.subr.bf16.mxu0 %v544_v0  ;;  %v400_v19 = vpack.c.bf16 %v76_v18, %v75_v17  ;;  %v78_v21 = vld [vmem:[#allocation6 + $0x68] sm:$0xff]  ;;  %v79_v23 = vld [vmem:[#allocation6 + $0x70] sm:$0xff]  ;;  %v80_v24 = vld [vmem:[#allocation6 + $0x78] sm:$0xff] }
  0x3c   :  { %v403_v22 = vpack.c.bf16 %v78_v21, %v77_v20  ;;  %v406_v25 = vpack.c.bf16 %v80_v24, %v79_v23  ;;  %v64_v26 = vld [vmem:[#allocation3] sm:$0xff]  ;;  %v167_v27 = vld [vmem:[#allocation8] sm:$0xff]  ;;  %v168_v28 = vld [vmem:[#allocation8 + $0x8] sm:$0xff] }
  0x3d   :  { %v409_v29 = vpack.c.bf16 %v168_v28, %v167_v27  ;;  %v169_v30 = vld [vmem:[#allocation8 + $0x10] sm:$0xff]  ;;  %v170_v31 = vld [vmem:[#allocation8 + $0x18] sm:$0xff]  ;;  %v171_v33 = vld [vmem:[#allocation8 + $0x20] sm:$0xff] }
  0x3e   :  { %389 = vmatpush3.bf16.msra.mxu0 %v388_v7  ;;  %v412_v32 = vpack.c.bf16 %v170_v31, %v169_v30  ;;  %v172_v34 = vld [vmem:[#allocation8 + $0x28] sm:$0xff]  ;;  %v173_v36 = vld [vmem:[#allocation8 + $0x30] sm:$0xff]  ;;  %v174_v37 = vld [vmem:[#allocation8 + $0x38] sm:$0xff] }
  0x3f   :  { %390 = vmatprep.subr.bf16.mxu0 %v544_v0  ;;  %410 = vmatpush3.bf16.msra.mxu1 %v409_v29  ;;  %v415_v35 = vpack.c.bf16 %v172_v34, %v171_v33  ;;  %v418_v38 = vpack.c.bf16 %v174_v37, %v173_v36  ;;  %v175_v39 = vld [vmem:[#allocation8 + $0x40] sm:$0xff]  ;;  %v176_v40 = vld [vmem:[#allocation8 + $0x48] sm:$0xff]  ;;  %v177_v42 = vld [vmem:[#allocation8 + $0x50] sm:$0xff] }
  0x40   :  { %411 = vmatprep.subr.bf16.mxu1 %v544_v0  ;;  %v421_v41 = vpack.c.bf16 %v176_v40, %v175_v39  ;;  %v178_v43 = vld [vmem:[#allocation8 + $0x58] sm:$0xff]  ;;  %v179_v45 = vld [vmem:[#allocation8 + $0x60] sm:$0xff]  ;;  %v180_v46 = vld [vmem:[#allocation8 + $0x68] sm:$0xff] }
  0x41   :  { %v424_v44 = vpack.c.bf16 %v178_v43, %v177_v42  ;;  %v427_v47 = vpack.c.bf16 %v180_v46, %v179_v45  ;;  %v181_v48 = vld [vmem:[#allocation8 + $0x70] sm:$0xff]  ;;  %v182_v49 = vld [vmem:[#allocation8 + $0x78] sm:$0xff] }
  0x42   :  { %392 = vmatpush3.bf16.msra.mxu0 %v391_v10  ;;  %v430_v50 = vpack.c.bf16 %v182_v49, %v181_v48  ;;  %v277_v51 = vld [vmem:[%s656_s2] ss:$0 sm:$0xff]  ;;  %s511_s2 = scalar_lea.vmem %s268_s8, 128 }
  0x43   :  { %393 = vmatprep.subr.bf16.mxu0 %v544_v0  ;;  %413 = vmatpush3.bf16.msra.mxu1 %v412_v32  ;;  %v279_v60 = vld [vmem:[%s658_s4] ss:$0 sm:$0xff]  ;;  %p512_p10 = scmp.ne.s32.totalorder %s268_s8, %s511_s2  ;;  %p517_p12 = scmp.lt.s32.totalorder %s511_s2, %s511_s2 }
  0x44   :  { %414 = vmatprep.subr.bf16.mxu1 %v544_v0 }
  0x45   :  { %p518_p13 = por %p517_p12, %p516_p11 }
  0x46   :  { %395 = vmatpush3.bf16.msra.mxu0 %v394_v13 }
  0x47   :  { %396 = vmatprep.subr.bf16.mxu0 %v544_v0  ;;  %416 = vmatpush3.bf16.msra.mxu1 %v415_v35  ;;  %p519_p0 = pnand %p518_p13, %p512_p10 }
  0x48   :  { %417 = vmatprep.subr.bf16.mxu1 %v544_v0 }
  0x4a   :  { %398 = vmatpush3.bf16.msra.mxu0 %v397_v16 }
  0x4b   :  { %399 = vmatprep.subr.bf16.mxu0 %v544_v0  ;;  %419 = vmatpush3.bf16.msra.mxu1 %v418_v38 }
  0x4c   :  { %420 = vmatprep.subr.bf16.mxu1 %v544_v0 }
  0x4e   :  { %401 = vmatpush3.bf16.msra.mxu0 %v400_v19 }
  0x4f   :  { %402 = vmatprep.subr.bf16.mxu0 %v544_v0  ;;  %422 = vmatpush3.bf16.msra.mxu1 %v421_v41 }
  0x50   :  { %423 = vmatprep.subr.bf16.mxu1 %v544_v0 }
  0x52   :  { %404 = vmatpush3.bf16.msra.mxu0 %v403_v22 }
  0x53   :  { %405 = vmatprep.subr.bf16.mxu0 %v544_v0  ;;  %425 = vmatpush3.bf16.msra.mxu1 %v424_v44 }
  0x54   :  { %426 = vmatprep.subr.bf16.mxu1 %v544_v0 }
  0x56   :  { %407 = vmatpush3.bf16.msra.mxu0 %v406_v25 }
  0x57   :  { %428 = vmatpush3.bf16.msra.mxu1 %v427_v47 }
  0x58   :  { %429 = vmatprep.subr.bf16.mxu1 %v544_v0 }
  0x59   :  { %347 = vmatmul.mubr.f32.vlgmr.msra.gmra.mrb[0].mxu0 %v64_v26 }
  0x5b   :  { %431 = vmatpush3.bf16.msra.mxu1 %v430_v50 }
 0x12c   :  { %v154_v52 = vpop.f32.mrb[0].mxu0 }
 0x12d   :  { %v155_v53 = vadd.f32 %v277_v51, %v154_v52  ;;  %v348_v54 = vpop.f32.mrb[1].mxu0 }
 0x12f   :  { %v278_v55 = vmul.f32 -1.442695, %v155_v53 }
 0x131   :  { %441 = vpow2.f32 %v278_v55 }
 0x13b   :  { %v442_v56 = vpop.eup %441 }
 0x13c   :  { %v161_v57 = vadd.f32 1.0, %v442_v56 }
 0x13e   :  { %443 = vrcp.f32 %v161_v57 }
 0x148   :  { %v444_v58 = vpop.eup %443 }
 0x149   :  { %v164_v59 = vmul.f32 %v444_v58, %v155_v53 }
 0x14b   :  { %382 = vmatmul.mubr.f32.vlgmr.msra.gmra.mrb[0].mxu1 %v164_v59 }
 0x21e   :  { %v256_v61 = vpop.f32.mrb[0].mxu1 }
 0x21f   :  { %v257_v62 = vadd.f32 %v279_v60, %v256_v61  ;;  %v383_v63 = vpop.f32.mrb[1].mxu1 }
 0x221   :  { %260 = vst [vmem:[#allocation9] sm:$0xff] %v257_v62 }
 0x222   :  { %522 = shalt.err (!%p519_p0)
}
 0x223   :  { %s523_s11 = scalar_lea.hbm %s659_s5, 128 }
 0x224   :  { %p524_p1 = scmp.ne.s32.totalorder %s659_s5, %s523_s11  ;;  %p527_p2 = scmp.lt.u32.totalorder %s523_s11, %s659_s5 }
 0x226   :  { %p529_p3 = pnand %p527_p2, %p524_p1 }
 0x228   :  { %532 = shalt.err (!%p529_p3)
}
 0x229   :  { %270 = dma.vmem_to_hbm [thread:$0]  %s268_s8, 128, %s659_s5, [#allocation5]  }
 0x22a   :  { %537 = dma.done.wait [#allocation5], 128  }
 0x22b   :  { %538 = vsyncadd [#allocation5], 4294967168 }
 0x22c   :  { %274 = vsyncpa [#allocation4], 1 }
 0x22d   :  { %275 = vsyncpa [#allocation7], 1 }
 0x22e   :  { %276 = vsyncpa [#allocation5], 1 }

// kernel: tpu_custom_call.1
= control target key start
LH: loop header
LB: loop body
LE: loop exit
PB: predicated region body
PF: predicated region fallthrough
CT: control target
= control target key end

     0   :  { %10 = vsyncpa [#allocation4], 0  ;;  %s654_s0 = inlined_call_operand.hbm [shape: f32[8,128], index: 0, kind: input, shape index: {}]   ;;  %s655_s1 = inlined_call_operand.hbm [shape: f32[128,128], index: 1, kind: input, shape index: {}]   ;;  %s656_s2 = inlined_call_operand.vmem [shape: f32[1,128], index: 2, kind: input, shape index: {}]   ;;  %s657_s3 = inlined_call_operand.hbm [shape: f32[128,128], index: 3, kind: input, shape index: {}]   ;;  %s658_s4 = inlined_call_operand.vmem [shape: f32[1,128], index: 4, kind: input, shape index: {}]   ;;  %s659_s5 = inlined_call_operand.hbm [shape: f32[8,128], index: 5, kind: output, shape index: {}]  }
   0x1   :  { %11 = vsyncpa [#allocation7], 0 }
   0x2   :  { %12 = vsyncpa [#allocation5], 0  ;;  %s539_s18 = smov [#allocation6]   ;;  %s445_s22 = scalar_lea.hbm %s655_s1, 2048 }
   0x3   :  { %s28_s19 = sshll.u32 %s539_s18, 4  ;;  %p446_p0 = scmp.ne.s32.totalorder %s655_s1, %s445_s22  ;;  %s29_s19 = int_to_ptr.vmem [resolvable:$true] %s28_s19 }
   0x4   :  { %p449_p1 = scmp.lt.u32.totalorder %s445_s22, %s655_s1 }
   0x6   :  { %p451_p2 = pnand %p449_p1, %p446_p0 }
   0x8   :  { %454 = shalt.err (!%p451_p2)
}
   0x9   :  { %s455_s27 = scalar_lea.vmem %s29_s19, 2048  ;;  %p460_p4 = scmp.lt.s32.totalorder %s29_s19, %s29_s19 }
   0xa   :  { %p456_p3 = scmp.ne.s32.totalorder %s29_s19, %s455_s27  ;;  %p461_p5 = scmp.lt.s32.totalorder %s455_s27, %s455_s27 }
   0xc   :  { %p462_p6 = por %p461_p5, %p460_p4 }
   0xe   :  { %p463_p7 = pnand %p462_p6, %p456_p3 }
  0x10   :  { %466 = shalt.err (!%p463_p7)
}
  0x11   :  { %s540_s28 = smov 128   ;;  %s541_s29 = smov 8  }
  0x12   :  { %34 = dma.hbm_to_vmem [thread:$0]  %s655_s1, 2048, %s29_s19, [#allocation7], %s540_s28, %s540_s28, %s541_s29  }
  0x13   :  { %s542_s7 = smov [#allocation3]   ;;  %s543_s9 = smov [#allocation8]  }
  0x14   :  { %s19_s8 = sshll.u32 %s542_s7, 4  ;;  %s42_s10 = sshll.u32 %s543_s9, 4  ;;  %s20_s8 = int_to_ptr.vmem [resolvable:$true] %s19_s8  ;;  %s43_s10 = int_to_ptr.vmem [resolvable:$true] %s42_s10 }
  0x15   :  { %s467_s13 = scalar_lea.hbm %s654_s0, 128 }
  0x16   :  { %p468_p8 = scmp.ne.s32.totalorder %s654_s0, %s467_s13  ;;  %p471_p9 = scmp.lt.u32.totalorder %s467_s13, %s654_s0 }
  0x18   :  { %p473_p10 = pnand %p471_p9, %p468_p8 }
  0x1a   :  { %476 = shalt.err (!%p473_p10)
}
  0x1b   :  { %s477_s1 = scalar_lea.vmem %s20_s8, 128  ;;  %p482_p12 = scmp.lt.s32.totalorder %s20_s8, %s20_s8 }
  0x1c   :  { %p478_p11 = scmp.ne.s32.totalorder %s20_s8, %s477_s1  ;;  %p483_p13 = scmp.lt.s32.totalorder %s477_s1, %s477_s1 }
  0x1e   :  { %p484_p0 = por %p483_p13, %p482_p12 }
  0x20   :  { %p485_p1 = pnand %p484_p0, %p478_p11 }
  0x22   :  { %488 = shalt.err (!%p485_p1)
}
  0x23   :  { %22 = dma.hbm_to_vmem [thread:$0]  %s654_s0, 128, %s20_s8, [#allocation4]  }
  0x24   :  { %s489_s22 = scalar_lea.hbm %s657_s3, 2048 }
  0x25   :  { %p490_p2 = scmp.ne.s32.totalorder %s657_s3, %s489_s22  ;;  %p493_p3 = scmp.lt.u32.totalorder %s489_s22, %s657_s3 }
  0x27   :  { %p495_p4 = pnand %p493_p3, %p490_p2 }
  0x29   :  { %498 = shalt.err (!%p495_p4)
}
  0x2a   :  { %s499_s27 = scalar_lea.vmem %s43_s10, 2048  ;;  %p504_p6 = scmp.lt.s32.totalorder %s43_s10, %s43_s10 }
  0x2b   :  { %p500_p5 = scmp.ne.s32.totalorder %s43_s10, %s499_s27  ;;  %p505_p7 = scmp.lt.s32.totalorder %s499_s27, %s499_s27 }
  0x2d   :  { %p506_p8 = por %p505_p7, %p504_p6 }
  0x2f   :  { %p507_p9 = pnand %p506_p8, %p500_p5 }
  0x31   :  { %510 = shalt.err (!%p507_p9)
}
  0x32   :  { %48 = dma.hbm_to_vmem [thread:$0]  %s657_s3, 2048, %s43_s10, [#allocation7], %s540_s28, %s540_s28, %s541_s29  }
  0x33   :  { %533 = dma.done.wait [#allocation4], 128  }
  0x34   :  { %534 = vsyncadd [#allocation4], 4294967168 }
  0x35   :  { %535 = dma.done.wait [#allocation7], 4096  }
  0x36   :  { %536 = vsyncadd [#allocation7], 4294963200  ;;  %v544_v0 = vmov 0.0|0.0   ;;  %vm545_vm0 = vmmov 0   ;;  %v546_v1 = vmov 0.0   ;;  %v65_v2 = vld [vmem:[#allocation6] sm:$0xff] }
  0x37   :  { %384 = vmatprep.subr.bf16.mxu0 %v544_v0  ;;  %346 = vmatprep.mubr.msk.f32.mxu0 %vm545_vm0, %v546_v1  ;;  %v66_v3 = vld [vmem:[#allocation6 + $0x8] sm:$0xff]  ;;  %v67_v4 = vld [vmem:[#allocation6 + $0x10] sm:$0xff]  ;;  %v68_v6 = vld [vmem:[#allocation6 + $0x18] sm:$0xff]  ;;  %s547_s7 = smov [#allocation9]  }
  0x38   :  { %408 = vmatprep.subr.bf16.mxu1 %v544_v0  ;;  %381 = vmatprep.mubr.msk.f32.mxu1 %vm545_vm0, %v546_v1  ;;  %v385_v5 = vpack.c.bf16 %v66_v3, %v65_v2  ;;  %v388_v7 = vpack.c.bf16 %v68_v6, %v67_v4  ;;  %v69_v8 = vld [vmem:[#allocation6 + $0x20] sm:$0xff]  ;;  %v70_v9 = vld [vmem:[#allocation6 + $0x28] sm:$0xff]  ;;  %v71_v11 = vld [vmem:[#allocation6 + $0x30] sm:$0xff]  ;;  %s267_s8 = sshll.u32 %s547_s7, 4  ;;  %s268_s8 = int_to_ptr.vmem [resolvable:$true] %s267_s8 }
  0x39   :  { %v391_v10 = vpack.c.bf16 %v70_v9, %v69_v8  ;;  %v72_v12 = vld [vmem:[#allocation6 + $0x38] sm:$0xff]  ;;  %v73_v14 = vld [vmem:[#allocation6 + $0x40] sm:$0xff]  ;;  %v74_v15 = vld [vmem:[#allocation6 + $0x48] sm:$0xff]  ;;  %p516_p11 = scmp.lt.s32.totalorder %s268_s8, %s268_s8 }
  0x3a   :  { %386 = vmatpush3.bf16.msra.mxu0 %v385_v5  ;;  %v394_v13 = vpack.c.bf16 %v72_v12, %v71_v11  ;;  %v397_v16 = vpack.c.bf16 %v74_v15, %v73_v14  ;;  %v75_v17 = vld [vmem:[#allocation6 + $0x50] sm:$0xff]  ;;  %v76_v18 = vld [vmem:[#allocation6 + $0x58] sm:$0xff]  ;;  %v77_v20 = vld [vmem:[#allocation6 + $0x60] sm:$0xff] }
  0x3b   :  { %387 = vmatprep.subr.bf16.mxu0 %v544_v0  ;;  %v400_v19 = vpack.c.bf16 %v76_v18, %v75_v17  ;;  %v78_v21 = vld [vmem:[#allocation6 + $0x68] sm:$0xff]  ;;  %v79_v23 = vld [vmem:[#allocation6 + $0x70] sm:$0xff]  ;;  %v80_v24 = vld [vmem:[#allocation6 + $0x78] sm:$0xff] }
  0x3c   :  { %v403_v22 = vpack.c.bf16 %v78_v21, %v77_v20  ;;  %v406_v25 = vpack.c.bf16 %v80_v24, %v79_v23  ;;  %v64_v26 = vld [vmem:[#allocation3] sm:$0xff]  ;;  %v167_v27 = vld [vmem:[#allocation8] sm:$0xff]  ;;  %v168_v28 = vld [vmem:[#allocation8 + $0x8] sm:$0xff] }
  0x3d   :  { %v409_v29 = vpack.c.bf16 %v168_v28, %v167_v27  ;;  %v169_v30 = vld [vmem:[#allocation8 + $0x10] sm:$0xff]  ;;  %v170_v31 = vld [vmem:[#allocation8 + $0x18] sm:$0xff]  ;;  %v171_v33 = vld [vmem:[#allocation8 + $0x20] sm:$0xff] }
  0x3e   :  { %389 = vmatpush3.bf16.msra.mxu0 %v388_v7  ;;  %v412_v32 = vpack.c.bf16 %v170_v31, %v169_v30  ;;  %v172_v34 = vld [vmem:[#allocation8 + $0x28] sm:$0xff]  ;;  %v173_v36 = vld [vmem:[#allocation8 + $0x30] sm:$0xff]  ;;  %v174_v37 = vld [vmem:[#allocation8 + $0x38] sm:$0xff] }
  0x3f   :  { %390 = vmatprep.subr.bf16.mxu0 %v544_v0  ;;  %410 = vmatpush3.bf16.msra.mxu1 %v409_v29  ;;  %v415_v35 = vpack.c.bf16 %v172_v34, %v171_v33  ;;  %v418_v38 = vpack.c.bf16 %v174_v37, %v173_v36  ;;  %v175_v39 = vld [vmem:[#allocation8 + $0x40] sm:$0xff]  ;;  %v176_v40 = vld [vmem:[#allocation8 + $0x48] sm:$0xff]  ;;  %v177_v42 = vld [vmem:[#allocation8 + $0x50] sm:$0xff] }
  0x40   :  { %411 = vmatprep.subr.bf16.mxu1 %v544_v0  ;;  %v421_v41 = vpack.c.bf16 %v176_v40, %v175_v39  ;;  %v178_v43 = vld [vmem:[#allocation8 + $0x58] sm:$0xff]  ;;  %v179_v45 = vld [vmem:[#allocation8 + $0x60] sm:$0xff]  ;;  %v180_v46 = vld [vmem:[#allocation8 + $0x68] sm:$0xff] }
  0x41   :  { %v424_v44 = vpack.c.bf16 %v178_v43, %v177_v42  ;;  %v427_v47 = vpack.c.bf16 %v180_v46, %v179_v45  ;;  %v181_v48 = vld [vmem:[#allocation8 + $0x70] sm:$0xff]  ;;  %v182_v49 = vld [vmem:[#allocation8 + $0x78] sm:$0xff] }
  0x42   :  { %392 = vmatpush3.bf16.msra.mxu0 %v391_v10  ;;  %v430_v50 = vpack.c.bf16 %v182_v49, %v181_v48  ;;  %v277_v51 = vld [vmem:[%s656_s2] ss:$0 sm:$0xff]  ;;  %s511_s2 = scalar_lea.vmem %s268_s8, 128 }
  0x43   :  { %393 = vmatprep.subr.bf16.mxu0 %v544_v0  ;;  %413 = vmatpush3.bf16.msra.mxu1 %v412_v32  ;;  %v279_v60 = vld [vmem:[%s658_s4] ss:$0 sm:$0xff]  ;;  %p512_p10 = scmp.ne.s32.totalorder %s268_s8, %s511_s2  ;;  %p517_p12 = scmp.lt.s32.totalorder %s511_s2, %s511_s2 }
  0x44   :  { %414 = vmatprep.subr.bf16.mxu1 %v544_v0 }
  0x45   :  { %p518_p13 = por %p517_p12, %p516_p11 }
  0x46   :  { %395 = vmatpush3.bf16.msra.mxu0 %v394_v13 }
  0x47   :  { %396 = vmatprep.subr.bf16.mxu0 %v544_v0  ;;  %416 = vmatpush3.bf16.msra.mxu1 %v415_v35  ;;  %p519_p0 = pnand %p518_p13, %p512_p10 }
  0x48   :  { %417 = vmatprep.subr.bf16.mxu1 %v544_v0 }
  0x4a   :  { %398 = vmatpush3.bf16.msra.mxu0 %v397_v16 }
  0x4b   :  { %399 = vmatprep.subr.bf16.mxu0 %v544_v0  ;;  %419 = vmatpush3.bf16.msra.mxu1 %v418_v38 }
  0x4c   :  { %420 = vmatprep.subr.bf16.mxu1 %v544_v0 }
  0x4e   :  { %401 = vmatpush3.bf16.msra.mxu0 %v400_v19 }
  0x4f   :  { %402 = vmatprep.subr.bf16.mxu0 %v544_v0  ;;  %422 = vmatpush3.bf16.msra.mxu1 %v421_v41 }
  0x50   :  { %423 = vmatprep.subr.bf16.mxu1 %v544_v0 }
  0x52   :  { %404 = vmatpush3.bf16.msra.mxu0 %v403_v22 }
  0x53   :  { %405 = vmatprep.subr.bf16.mxu0 %v544_v0  ;;  %425 = vmatpush3.bf16.msra.mxu1 %v424_v44 }
  0x54   :  { %426 = vmatprep.subr.bf16.mxu1 %v544_v0 }
  0x56   :  { %407 = vmatpush3.bf16.msra.mxu0 %v406_v25 }
  0x57   :  { %428 = vmatpush3.bf16.msra.mxu1 %v427_v47 }
  0x58   :  { %429 = vmatprep.subr.bf16.mxu1 %v544_v0 }
  0x59   :  { %347 = vmatmul.mubr.f32.vlgmr.msra.gmra.mrb[0].mxu0 %v64_v26 }
  0x5b   :  { %431 = vmatpush3.bf16.msra.mxu1 %v430_v50 }
 0x12c   :  { %v154_v52 = vpop.f32.mrb[0].mxu0 }
 0x12d   :  { %v155_v53 = vadd.f32 %v277_v51, %v154_v52  ;;  %v348_v54 = vpop.f32.mrb[1].mxu0 }
 0x12f   :  { %v278_v55 = vmul.f32 -1.442695, %v155_v53 }
 0x131   :  { %441 = vpow2.f32 %v278_v55 }
 0x13b   :  { %v442_v56 = vpop.eup %441 }
 0x13c   :  { %v161_v57 = vadd.f32 1.0, %v442_v56 }
 0x13e   :  { %443 = vrcp.f32 %v161_v57 }
 0x148   :  { %v444_v58 = vpop.eup %443 }
 0x149   :  { %v164_v59 = vmul.f32 %v444_v58, %v155_v53 }
 0x14b   :  { %382 = vmatmul.mubr.f32.vlgmr.msra.gmra.mrb[0].mxu1 %v164_v59 }
 0x21e   :  { %v256_v61 = vpop.f32.mrb[0].mxu1 }
 0x21f   :  { %v257_v62 = vadd.f32 %v279_v60, %v256_v61  ;;  %v383_v63 = vpop.f32.mrb[1].mxu1 }
 0x221   :  { %260 = vst [vmem:[#allocation9] sm:$0xff] %v257_v62 }
 0x222   :  { %522 = shalt.err (!%p519_p0)
}
 0x223   :  { %s523_s11 = scalar_lea.hbm %s659_s5, 128 }
 0x224   :  { %p524_p1 = scmp.ne.s32.totalorder %s659_s5, %s523_s11  ;;  %p527_p2 = scmp.lt.u32.totalorder %s523_s11, %s659_s5 }
 0x226   :  { %p529_p3 = pnand %p527_p2, %p524_p1 }
 0x228   :  { %532 = shalt.err (!%p529_p3)
}
 0x229   :  { %270 = dma.vmem_to_hbm [thread:$0]  %s268_s8, 128, %s659_s5, [#allocation5]  }
 0x22a   :  { %537 = dma.done.wait [#allocation5], 128  }
 0x22b   :  { %538 = vsyncadd [#allocation5], 4294967168 }
 0x22c   :  { %274 = vsyncpa [#allocation4], 1 }
 0x22d   :  { %275 = vsyncpa [#allocation7], 1 }
 0x22e   :  { %276 = vsyncpa [#allocation5], 1 }

</bundles_post_ra>
